<compile_context>
chip_gen: v7x
topology: tpu7x:2x2x1
jax: 0.10.0
libtpu: 0.0.40
codegen_flags: <defaults>
</compile_context>

<pallas_src>
import math
from functools import partial

import jax
import jax.numpy as jnp
from jax.experimental import pallas as pl
from jax.experimental.pallas import tpu as pltpu


def _round_up(x, m):
    return ((x + m - 1) // m) * m


# ---------------------------------------------------------------------------
# Kernels
# ---------------------------------------------------------------------------
def classblock_kernel(x_ref, w1_ref, w2_ref, b2_ref, out_ref, h_ref):
    """Eval path (no LeakyReLU): Linear1 bias already folded into b2 by the wrapper."""
    # First GEMM computed once per batch tile (class axis is 'arbitrary' and innermost),
    # cached in VMEM scratch as bf16 so every class tile reuses it.
    @pl.when(pl.program_id(1) == 0)
    def _():
        h = jnp.dot(x_ref[...], w1_ref[...], preferred_element_type=jnp.float32)
        h_ref[...] = h.astype(h_ref.dtype)

    out = jnp.dot(h_ref[...], w2_ref[...], preferred_element_type=jnp.float32)
    out_ref[...] = (out + b2_ref[...]).astype(out_ref.dtype)


def classblock_kernel_relu(x_ref, w1_ref, b1_ref, w2_ref, b2_ref, out_ref, h_ref):
    """LeakyReLU(0.1) path: bias must be applied before the nonlinearity, so it stays."""
    @pl.when(pl.program_id(1) == 0)
    def _():
        h = jnp.dot(x_ref[...], w1_ref[...], preferred_element_type=jnp.float32)
        h = h + b1_ref[...]
        h = jnp.where(h >= 0, h, 0.1 * h)
        h_ref[...] = h.astype(h_ref.dtype)

    out = jnp.dot(h_ref[...], w2_ref[...], preferred_element_type=jnp.float32)
    out_ref[...] = (out + b2_ref[...]).astype(out_ref.dtype)


# ---------------------------------------------------------------------------
# One-time (model-load) parameter preparation — hoisted off the per-call path
# ---------------------------------------------------------------------------
def prepare_class_block_params(params, *, use_relu=False, bn_eps=1e-5,
                               tile_n=2048, param_dtype=jnp.bfloat16):
    """Fold BN into Linear1, cast weights to bf16, pad the class dim to a lane/tile
    multiple, and (when use_relu=False) fold Linear1's bias into Linear2's bias."""
    D_in, L = params["w1"].shape
    C = params["w2"].shape[1]

    # Fold BatchNorm1d (eval, running stats) into the first Linear.
    scale = params["gamma"] / jnp.sqrt(params["running_var"] + bn_eps)          # (1, L)
    w1_f = params["w1"] * scale                                                  # (D_in, L)
    b1_f = (params["b1"] - params["running_mean"]) * scale + params["beta"]      # (1, L)

    w2 = params["w2"]
    b2 = params["b2"]
    if not use_relu:
        # Everything between the two Linears is affine/identity at eval time, so
        # (x@W1' + b1') @ W2 + b2 == x@W1'@W2 + (b1'@W2 + b2). Exact fold (done in f32).
        b2 = b2 + b1_f @ w2

    # Pad class dim for lane-dense, unmasked stores and clean tn tiling.
    C_pad = _round_up(C, 128)
    tn = min(tile_n, C_pad)
    C_pad = _round_up(C_pad, tn)

    w2_c = w2.astype(param_dtype)
    b2_c = b2.astype(jnp.float32)
    if C_pad != C:
        w2_c = jnp.pad(w2_c, ((0, 0), (0, C_pad - C)))
        b2_c = jnp.pad(b2_c, ((0, 0), (0, C_pad - C)))

    prepared = dict(
        w1=w1_f.astype(param_dtype),
        w2=w2_c,
        b2=b2_c,
        use_relu=use_relu,
        param_dtype=param_dtype,
        tn=tn, C=C, C_pad=C_pad, L=L, D_in=D_in,
    )
    if use_relu:
        prepared["b1"] = b1_f.astype(jnp.float32)
    return prepared


# ---------------------------------------------------------------------------
# Forward wrapper
# ---------------------------------------------------------------------------
def class_block_forward(x, prepared, *, tile_m=256, out_dtype=jnp.float32):
    """ClassBlock eval-mode forward: single tiled/pipelined Pallas kernel.

    x: (B, input_dim) float32
    prepared: output of prepare_class_block_params (model-load-time preprocessing)
    returns: (B, class_num) out_dtype logits
    """
    B, D_in = x.shape
    assert D_in == prepared["D_in"]
    L = prepared["L"]
    C, C_pad, tn = prepared["C"], prepared["C_pad"], prepared["tn"]
    param_dtype = prepared["param_dtype"]
    use_relu = prepared["use_relu"]

    # Batch tiling: multiple of 16 (bf16 sublane packing). tm=256 feeds the full
    # 256-wide MXU on v6e/v7x; fine on v5e's 4x128 array.
    tm = min(tile_m, _round_up(B, 16))
    B_pad = _round_up(B, tm)
    # TODO(synk): on v7x, grid[0] == 1 (single batch tile) leaves the second TensorCore
    # idle; splitting the class axis two ways per-core would recover it at the cost of
    # recomputing the (cheap, cached) first GEMM once per core.

    x_c = x.astype(param_dtype)
    if B_pad != B:
        x_c = jnp.pad(x_c, ((0, B_pad - B), (0, 0)))

    grid = (B_pad // tm, C_pad // tn)

    in_specs = [
        pl.BlockSpec((tm, D_in), lambda i, j: (i, 0)),   # x: resident across class tiles
        pl.BlockSpec((D_in, L), lambda i, j: (0, 0)),    # folded W1: fully resident
    ]
    inputs = [x_c, prepared["w1"]]
    if use_relu:
        in_specs.append(pl.BlockSpec((1, L), lambda i, j: (0, 0)))   # folded b1
        inputs.append(prepared["b1"])
    in_specs += [
        pl.BlockSpec((L, tn), lambda i, j: (0, j)),      # W2 tile: streamed over class
        pl.BlockSpec((1, tn), lambda i, j: (0, j)),      # b2 tile
    ]
    inputs += [prepared["w2"], prepared["b2"]]

    # Explicit VMEM budget (v5e's scoped default is only 16 MiB; v7x physical is 64 MiB).
    vmem_bytes = (
        2 * tm * D_in * 2        # x (double-buffered, bf16)
        + 2 * D_in * L * 2       # W1 (double-buffered, bf16)
        + 2 * L * tn * 2         # W2 tiles
        + 2 * tn * 4             # b2 tiles
        + 2 * tm * tn * 4        # out tiles (f32)
        + tm * L * 2             # h scratch (bf16)
        + tm * max(L, tn) * 4    # live f32 intermediates
    )
    vmem_limit = int(min(max(vmem_bytes * 2, 32 * 1024 * 1024), 60 * 1024 * 1024))

    kernel = classblock_kernel_relu if use_relu else classblock_kernel

    out = pl.pallas_call(
        kernel,
        out_shape=jax.ShapeDtypeStruct((B_pad, C_pad), out_dtype),
        grid_spec=pltpu.PrefetchScalarGridSpec(
            num_scalar_prefetch=0,
            grid=grid,
            in_specs=in_specs,
            out_specs=pl.BlockSpec((tm, tn), lambda i, j: (i, j)),
            scratch_shapes=[pltpu.VMEM((tm, L), param_dtype)],   # cached h
        ),
        compiler_params=pltpu.CompilerParams(
            # Class axis MUST be 'arbitrary' (sequential, innermost) so the cached h
            # scratch stays valid; batch axis 'parallel' for megacore sharding.
            dimension_semantics=("parallel", "arbitrary"),
            vmem_limit_bytes=vmem_limit,
        ),
    )(*inputs)

    return out[:B, :C]


# ---------------------------------------------------------------------------
# Init + reference
# ---------------------------------------------------------------------------
def init_class_block_params(key, input_dim, linear, class_num):
    """Deterministic params matching weights_init_kaiming / weights_init_classifier."""
    k1, k2, k3 = jax.random.split(key, 3)

    # Linear(input_dim, linear): kaiming_normal_(a=0, mode='fan_out') -> std = sqrt(2/fan_out)
    std1 = math.sqrt(2.0 / linear)
    w1 = jax.random.normal(k1, (input_dim, linear), jnp.float32) * std1
    b1 = jnp.zeros((1, linear), jnp.float32)

    # BatchNorm1d(linear): weight ~ N(1.0, 0.02), bias = 0, fresh running stats
    gamma = 1.0 + 0.02 * jax.random.normal(k2, (1, linear), jnp.float32)
    beta = jnp.zeros((1, linear), jnp.float32)
    running_mean = jnp.zeros((1, linear), jnp.float32)
    running_var = jnp.ones((1, linear), jnp.float32)

    # classifier Linear(linear, class_num): weight ~ N(0, 0.001), bias = 0
    w2 = 0.001 * jax.random.normal(k3, (linear, class_num), jnp.float32)
    b2 = jnp.zeros((1, class_num), jnp.float32)

    return dict(w1=w1, b1=b1, gamma=gamma, beta=beta,
                running_mean=running_mean, running_var=running_var, w2=w2, b2=b2)


def class_block_reference(x, params, *, use_relu=False, bn_eps=1e-5,
                          param_dtype=jnp.bfloat16):
    """Plain-JAX reference mirroring the kernel's bf16-operand / f32-accumulate math."""
    scale = params["gamma"] / jnp.sqrt(params["running_var"] + bn_eps)
    w1_f = (params["w1"] * scale).astype(param_dtype).astype(jnp.float32)
    b1_f = (params["b1"] - params["running_mean"]) * scale + params["beta"]
    xb = x.astype(param_dtype).astype(jnp.float32)
    w2b = params["w2"].astype(param_dtype).astype(jnp.float32)
    if use_relu:
        h = xb @ w1_f + b1_f
        h = jnp.where(h >= 0, h, 0.1 * h)
        hb = h.astype(param_dtype).astype(jnp.float32)
        return hb @ w2b + params["b2"]
    else:
        hb = (xb @ w1_f).astype(param_dtype).astype(jnp.float32)
        b2_eff = params["b2"] + b1_f @ params["w2"]   # exact b1 -> b2 fold (f32)
        return hb @ w2b + b2_eff


if __name__ == "__main__":
    # Small shapes consistent with ClassBlock(input_dim, class_num, droprate, linear=...)
    B, input_dim, linear, class_num = 8, 32, 64, 16

    key = jax.random.PRNGKey(0)
    kx, kp = jax.random.split(key)
    x = jax.random.normal(kx, (B, input_dim), jnp.float32)
    params = init_class_block_params(kp, input_dim, linear, class_num)

    for use_relu in (False, True):
        prepared = prepare_class_block_params(params, use_relu=use_relu)
        out = class_block_forward(x, prepared)
        out = jax.block_until_ready(out)

        ref = class_block_reference(x, params, use_relu=use_relu)
        assert out.shape == (B, class_num)
        # bf16 operands -> loosened tolerance (f32 accumulation keeps error small).
        assert jnp.allclose(out, ref, atol=1e-2, rtol=1e-2), \
            f"mismatch vs reference (use_relu={use_relu})"

    print("KERNEL_OK")
</pallas_src>

<mosaic_0001>
module attributes {stable_mosaic.version = 11 : i64} {
  func.func @classblock_kernel(%arg0: i32, %arg1: i32, %arg2: memref<16x32xbf16, #tpu.memory_space<vmem>>, %arg3: memref<32x64xbf16, #tpu.memory_space<vmem>>, %arg4: memref<64x128xbf16, #tpu.memory_space<vmem>>, %arg5: memref<1x128xf32, #tpu.memory_space<vmem>>, %arg6: memref<16x128xf32, #tpu.memory_space<vmem>>, %arg7: memref<16x64xbf16, #tpu.memory_space<vmem>>) attributes {dimension_semantics = [#tpu.dimension_semantics<parallel>, #tpu.dimension_semantics<arbitrary>], iteration_bounds = array<i64: 1, 1>, scalar_prefetch = 0 : i64, scratch_operands = 1 : i64, tpu.core_type = #tpu.core_type<tc>, window_params = [{transform_indices = @transform_0, window_bounds = array<i64: 16, 32>}, {pipeline_mode = #tpu.pipeline_mode<synchronous>, transform_indices = @transform_1, window_bounds = array<i64: 32, 64>}, {transform_indices = @transform_2, window_bounds = array<i64: 64, 128>}, {transform_indices = @transform_3, window_bounds = array<i64: 1, 128>}, {transform_indices = @transform_4, window_bounds = array<i64: 16, 128>}]} {
    %c0_i32 = arith.constant 0 : i32
    %0 = arith.cmpi eq, %arg1, %c0_i32 : i32
    %1 = arith.extui %0 : i1 to i32
    %c0_i32_0 = arith.constant 0 : i32
    %2 = arith.cmpi ne, %1, %c0_i32_0 : i32
    scf.if %2 {
      %c0_8 = arith.constant 0 : index
      %c0_9 = arith.constant 0 : index
      %10 = vector.load %arg2[%c0_8, %c0_9] : memref<16x32xbf16, #tpu.memory_space<vmem>>, vector<16x32xbf16>
      %c0_10 = arith.constant 0 : index
      %c0_11 = arith.constant 0 : index
      %11 = vector.load %arg3[%c0_10, %c0_11] : memref<32x64xbf16, #tpu.memory_space<vmem>>, vector<32x64xbf16>
      %cst_12 = arith.constant dense<0.000000e+00> : vector<16x64xf32>
      %12 = tpu.matmul %10, %11, %cst_12 {dimension_numbers = #tpu.dot_dimension_numbers<[1], [0], [0], [1], [0, 0, 1, 1], [], []>} : vector<16x32xbf16>, vector<32x64xbf16>, vector<16x64xf32> -> vector<16x64xf32>
      %13 = arith.truncf %12 : vector<16x64xf32> to vector<16x64xbf16>
      %c0_13 = arith.constant 0 : index
      %c0_14 = arith.constant 0 : index
      %14 = vector.load %arg7[%c0_13, %c0_14] : memref<16x64xbf16, #tpu.memory_space<vmem>>, vector<16x64xbf16>
      tpu.vector_store %arg7[%c0_13, %c0_14], %13 {strides = array<i32>} : memref<16x64xbf16, #tpu.memory_space<vmem>>, vector<16x64xbf16>,
    } else {
    }
    %c0 = arith.constant 0 : index
    %c0_1 = arith.constant 0 : index
    %3 = vector.load %arg7[%c0, %c0_1] : memref<16x64xbf16, #tpu.memory_space<vmem>>, vector<16x64xbf16>
    %c0_2 = arith.constant 0 : index
    %c0_3 = arith.constant 0 : index
    %4 = vector.load %arg4[%c0_2, %c0_3] : memref<64x128xbf16, #tpu.memory_space<vmem>>, vector<64x128xbf16>
    %cst = arith.constant dense<0.000000e+00> : vector<16x128xf32>
    %5 = tpu.matmul %3, %4, %cst {dimension_numbers = #tpu.dot_dimension_numbers<[1], [0], [0], [1], [0, 0, 1, 1], [], []>} : vector<16x64xbf16>, vector<64x128xbf16>, vector<16x128xf32> -> vector<16x128xf32>
    %c0_4 = arith.constant 0 : index
    %c0_5 = arith.constant 0 : index
    %6 = vector.load %arg5[%c0_4, %c0_5] : memref<1x128xf32, #tpu.memory_space<vmem>>, vector<1x128xf32>
    %7 = vector.broadcast %6 : vector<1x128xf32> to vector<16x128xf32>
    %8 = arith.addf %5, %7 : vector<16x128xf32>
    %c0_6 = arith.constant 0 : index
    %c0_7 = arith.constant 0 : index
    %9 = vector.load %arg6[%c0_6, %c0_7] : memref<16x128xf32, #tpu.memory_space<vmem>>, vector<16x128xf32>
    tpu.vector_store %arg6[%c0_6, %c0_7], %8 {strides = array<i32>} : memref<16x128xf32, #tpu.memory_space<vmem>>, vector<16x128xf32>,
    return
  }
  func.func @transform_0(%arg0: i32, %arg1: i32) -> (i32, i32) {
    %c0_i32 = arith.constant 0 : i32
    %c0_i32_0 = arith.constant 0 : i32
    return %arg0, %c0_i32 : i32, i32
  }
  func.func @transform_1(%arg0: i32, %arg1: i32) -> (i32, i32) {
    %c0_i32 = arith.constant 0 : i32
    %c0_i32_0 = arith.constant 0 : i32
    %c0_i32_1 = arith.constant 0 : i32
    return %c0_i32, %c0_i32_0 : i32, i32
  }
  func.func @transform_2(%arg0: i32, %arg1: i32) -> (i32, i32) {
    %c0_i32 = arith.constant 0 : i32
    %c0_i32_0 = arith.constant 0 : i32
    return %c0_i32, %arg1 : i32, i32
  }
  func.func @transform_3(%arg0: i32, %arg1: i32) -> (i32, i32) {
    %c0_i32 = arith.constant 0 : i32
    %c0_i32_0 = arith.constant 0 : i32
    return %c0_i32, %arg1 : i32, i32
  }
  func.func @transform_4(%arg0: i32, %arg1: i32) -> (i32, i32) {
    %c0_i32 = arith.constant 0 : i32
    return %arg0, %arg1 : i32, i32
  }
}

</mosaic_0001>

<bundles_post_ra>
// kernel: tpu_custom_call.1
= control target key start
LH: loop header
LB: loop body
LE: loop exit
PB: predicated region body
PF: predicated region fallthrough
CT: control target
= control target key end

     0   :  { %9 = vsyncpa [#allocation4], 0  ;;  %s491_s0 = inlined_call_operand.hbm [shape: bf16[16,32], index: 0, kind: input, shape index: {}]   ;;  %s492_s1 = inlined_call_operand.hbm [shape: bf16[32,64], index: 1, kind: input, shape index: {}]   ;;  %s493_s2 = inlined_call_operand.hbm [shape: bf16[64,128], index: 2, kind: input, shape index: {}]   ;;  %s494_s3 = inlined_call_operand.vmem [shape: f32[1,128], index: 3, kind: input, shape index: {}]   ;;  %s495_s4 = inlined_call_operand.hbm [shape: f32[16,128], index: 4, kind: output, shape index: {}]  }
   0x1   :  { %10 = vsyncpa [#allocation7], 0 }
   0x2   :  { %11 = vsyncpa [#allocation5], 0  ;;  %s389_s15 = smov [#allocation6]   ;;  %s390_s17 = smov [#allocation3]  }
   0x3   :  { %s29_s16 = sshll.u32 %s389_s15, 4  ;;  %s17_s18 = sshll.u32 %s390_s17, 4  ;;  %s30_s16 = int_to_ptr.vmem [resolvable:$true] %s29_s16  ;;  %s424_s18 = int_to_ptr.vmem [resolvable:$true] %s17_s18 }
   0x4   :  { %s295_s21 = scalar_lea.hbm %s492_s1, 256 }
   0x5   :  { %p296_p0 = scmp.ne.s32.totalorder %s492_s1, %s295_s21  ;;  %p299_p1 = scmp.lt.u32.totalorder %s295_s21, %s492_s1 }
   0x7   :  { %p301_p2 = pnand %p299_p1, %p296_p0 }
   0x9   :  { %304 = shalt.err (!%p301_p2)
}
   0xa   :  { %s305_s26 = scalar_lea.vmem %s30_s16, 256  ;;  %p310_p4 = scmp.lt.s32.totalorder %s30_s16, %s30_s16 }
   0xb   :  { %p306_p3 = scmp.ne.s32.totalorder %s30_s16, %s305_s26  ;;  %p311_p5 = scmp.lt.s32.totalorder %s305_s26, %s305_s26 }
   0xd   :  { %p312_p6 = por %p311_p5, %p310_p4 }
   0xf   :  { %p313_p7 = pnand %p312_p6, %p306_p3 }
  0x11   :  { %316 = shalt.err (!%p313_p7)
}
  0x12   :  { %s391_s27 = smov 64   ;;  %s392_s28 = smov 4  }
  0x13   :  { %35 = dma.hbm_to_vmem [thread:$0]  %s492_s1, 256, %s30_s16, [#allocation7], %s391_s27, %s391_s27, %s392_s28  }
  0x14   :  { %s317_s7 = scalar_lea.hbm %s491_s0, 128 }
  0x15   :  { %p318_p8 = scmp.ne.s32.totalorder %s491_s0, %s317_s7  ;;  %p321_p9 = scmp.lt.u32.totalorder %s317_s7, %s491_s0 }
  0x17   :  { %p323_p10 = pnand %p321_p9, %p318_p8 }
  0x19   :  { %326 = shalt.err (!%p323_p10)
}
  0x1a   :  { %s327_s12 = scalar_lea.vmem %s424_s18, 128  ;;  %p332_p12 = scmp.lt.s32.totalorder %s424_s18, %s424_s18 }
  0x1b   :  { %p328_p11 = scmp.ne.s32.totalorder %s424_s18, %s327_s12  ;;  %p333_p13 = scmp.lt.s32.totalorder %s327_s12, %s327_s12 }
  0x1d   :  { %p334_p0 = por %p333_p13, %p332_p12 }
  0x1f   :  { %p335_p1 = pnand %p334_p0, %p328_p11 }
  0x21   :  { %338 = shalt.err (!%p335_p1)
}
  0x22   :  { %23 = dma.hbm_to_vmem [thread:$0]  %s491_s0, 128, %s424_s18, [#allocation4], %s391_s27, %s391_s27, %s392_s28  }
  0x23   :  { %s393_s14 = smov [#allocation8]   ;;  %s339_s19 = scalar_lea.hbm %s493_s2, 512 }
  0x24   :  { %s41_s15 = sshll.u32 %s393_s14, 4  ;;  %p340_p2 = scmp.ne.s32.totalorder %s493_s2, %s339_s19  ;;  %s42_s15 = int_to_ptr.vmem [resolvable:$true] %s41_s15 }
  0x25   :  { %p343_p3 = scmp.lt.u32.totalorder %s339_s19, %s493_s2 }
  0x27   :  { %p345_p4 = pnand %p343_p3, %p340_p2 }
  0x29   :  { %348 = shalt.err (!%p345_p4)
}
  0x2a   :  { %s349_s24 = scalar_lea.vmem %s42_s15, 512  ;;  %p354_p6 = scmp.lt.s32.totalorder %s42_s15, %s42_s15 }
  0x2b   :  { %p350_p5 = scmp.ne.s32.totalorder %s42_s15, %s349_s24  ;;  %p355_p7 = scmp.lt.s32.totalorder %s349_s24, %s349_s24 }
  0x2d   :  { %p356_p8 = por %p355_p7, %p354_p6 }
  0x2f   :  { %p357_p9 = pnand %p356_p8, %p350_p5 }
  0x31   :  { %360 = shalt.err (!%p357_p9)
}
  0x32   :  { %47 = dma.hbm_to_vmem [thread:$0]  %s493_s2, 512, %s42_s15, [#allocation7], %s391_s27, %s391_s27, %s392_s28  }
  0x33   :  { %383 = dma.done.wait [#allocation4], 128  }
  0x34   :  { %384 = vsyncadd [#allocation4], 4294967168 }
  0x35   :  { %385 = dma.done.wait [#allocation7], 768  }
  0x36   :  { %386 = vsyncadd [#allocation7], 4294966528  ;;  %v394_v0 = vmov 0.0   ;;  %vm395_vm0 = vmmov 0   ;;  %v288_v1 = vld [vmem:[#allocation6] sm:$0xff]   ;;  %v289_v2 = vld [vmem:[#allocation6 + $0x8] sm:$0xff]  }
  0x37   :  { %258 = vmatprep.subr.bf16.mxu0 %v394_v0  ;;  %262 = vmatprep.mubr.msk.bf16.mxu0 %vm395_vm0, %v394_v0  ;;  %v290_v3 = vld [vmem:[#allocation3] sm:$0xff]   ;;  %v291_v4 = vld [vmem:[#allocation8] sm:$0xff]   ;;  %vm87_vm1 = vcmask 261120   ;;  %v293_v6 = vld [vmem:[#allocation8 + $0x10] sm:$0xff]   ;;  %vm133_vm2 = vcmask 523264   ;;  %s396_s26 = smov [#allocation9]  }
  0x38   :  { %266 = vmatprep.subr.bf16.mxu1 %v394_v0  ;;  %274 = vmatprep.mubr.msk.bf16.mxu1 %vm395_vm0, %v394_v0  ;;  %v292_v5 = vld [vmem:[#allocation8 + $0x8] sm:$0xff]   ;;  %v294_v7 = vld [vmem:[#allocation8 + $0x18] sm:$0xff]   ;;  %v244_v14 = vld [vmem:[%s494_s3] ss:$0 sm:$0xff]  ;;  %s227_s27 = sshll.u32 %s396_s26, 4  ;;  %s228_s27 = int_to_ptr.vmem [resolvable:$true] %s227_s27 }
  0x39   :  { %259 = vmatpush3.bf16.msra.mxu0 %v288_v1  ;;  %267 = vmatpush3.bf16.msra.mxu1 %v291_v4  ;;  %s361_s28 = scalar_lea.vmem %s228_s27, 256  ;;  %p366_p11 = scmp.lt.s32.totalorder %s228_s27, %s228_s27 }
  0x3a   :  { %260 = vmatprep.subr.bf16.mxu0 %v394_v0  ;;  %268 = vmatprep.subr.bf16.mxu1 %v394_v0  ;;  %p362_p10 = scmp.ne.s32.totalorder %s228_s27, %s361_s28  ;;  %p367_p12 = scmp.lt.s32.totalorder %s361_s28, %s361_s28 }
  0x3c   :  { %p368_p13 = por %p367_p12, %p366_p11 }
  0x3d   :  { %261 = vmatpush3.bf16.msra.mxu0 %v289_v2  ;;  %269 = vmatpush3.bf16.msra.mxu1 %v292_v5 }
  0x3e   :  { %270 = vmatprep.subr.bf16.mxu1 %v394_v0  ;;  %p369_p0 = pnand %p368_p13, %p362_p10 }
  0x40   :  { %263 = vmatmul.mubr.msk.bf16.vlgmr.msra.gmra.mrb[0].mxu0 %vm87_vm1, %v290_v3 }
  0x41   :  { %271 = vmatpush3.bf16.msra.mxu1 %v293_v6 }
  0x42   :  { %272 = vmatprep.subr.bf16.mxu1 %v394_v0 }
  0x45   :  { %273 = vmatpush3.bf16.msra.mxu1 %v294_v7 }
 0x113   :  { %v125_v8 = vpop.f32.mrb[0].mxu0 }
 0x114   :  { %v264_v9 = vpop.f32.mrb[1].mxu0 }
 0x115   :  { %v128_v10 = vpop.f32.mrb[2].mxu0 }
 0x116   :  { %v132_v11 = vpack.c.bf16 %v128_v10, %v125_v8  ;;  %v265_v12 = vpop.f32.mrb[3].mxu0 }
 0x118   :  { %134 = vst.msk [vmem:[#allocation2] sm:$0xff] %vm133_vm2, %v132_v11 }
 0x11f   :  { %v135_v13 = vld [vmem:[#allocation2] sm:$0xff] }
 0x120   :  { %275 = vmatmul.mubr.msk.bf16.vlgmr.msra.gmra.mrb[0].mxu1 %vm133_vm2, %v135_v13 }
 0x1f3   :  { %v213_v15 = vpop.f32.mrb[0].mxu1 }
 0x1f4   :  { %v214_v16 = vadd.f32 %v244_v14, %v213_v15  ;;  %v276_v17 = vpop.f32.mrb[1].mxu1 }
 0x1f5   :  { %v216_v18 = vpop.f32.mrb[2].mxu1 }
 0x1f6   :  { %220 = vst [vmem:[#allocation9] sm:$0xff] %v214_v16  ;;  %v217_v19 = vadd.f32 %v244_v14, %v216_v18  ;;  %v277_v20 = vpop.f32.mrb[3].mxu1 }
 0x1f8   :  { %221 = vst [vmem:[#allocation9 + $0x8] sm:$0xff] %v217_v19 }
 0x1f9   :  { %372 = shalt.err (!%p369_p0)
}
 0x1fa   :  { %s373_s30 = scalar_lea.hbm %s495_s4, 256 }
 0x1fb   :  { %p374_p1 = scmp.ne.s32.totalorder %s495_s4, %s373_s30  ;;  %p377_p2 = scmp.lt.u32.totalorder %s373_s30, %s495_s4 }
 0x1fd   :  { %p379_p3 = pnand %p377_p2, %p374_p1 }
 0x1ff   :  { %382 = shalt.err (!%p379_p3)
}
 0x200   :  { %s397_s9 = smov 128   ;;  %s398_s10 = smov 8  }
 0x201   :  { %233 = dma.vmem_to_hbm [thread:$0]  %s228_s27, 256, %s495_s4, [#allocation5], %s397_s9, %s397_s9, %s398_s10  }
 0x202   :  { %387 = dma.done.wait [#allocation5], 256  }
 0x203   :  { %388 = vsyncadd [#allocation5], 4294967040 }
 0x204   :  { %237 = vsyncpa [#allocation4], 1 }
 0x205   :  { %238 = vsyncpa [#allocation7], 1 }
 0x206   :  { %239 = vsyncpa [#allocation5], 1 }

</bundles_post_ra>
